<compile_context>
chip_gen: v6e
topology: v6e:2x2x1
jax: 0.10.0
libtpu: 0.0.40
codegen_flags: <defaults>
</compile_context>

<pallas_src>
import functools

import jax
import jax.numpy as jnp
from jax.experimental import pallas as pl
from jax.experimental.pallas import tpu as pltpu


def _round_up(x, m):
    return (x + m - 1) // m * m


def _influence_kernel(v_ref, q_ref, k_ref, y_ref, out_ref, pair_ref, *,
                      tanh_dtype, lanes):
    # v_ref   : (d_pad,)       f32, SMEM  score_vec weights (0 on feature pad)
    # q_ref   : (ta, dc)       f32, VMEM  projected-actor d-chunk
    # k_ref   : (dc, tb_block) f32, VMEM  projected-bill d-chunk (bills on lanes)
    # y_ref   : (tb_block, 1)  f32, VMEM  bill weights * 1/B (0 on bill pad)
    # out_ref : (ta, 1)        f32        resident across the (j, c) axes
    # pair_ref: (ta, tb_block) f32, VMEM  pair accumulator across d-chunks
    j = pl.program_id(1)
    c = pl.program_id(2)

    @pl.when((j == 0) & (c == 0))
    def _():
        out_ref[...] = jnp.zeros_like(out_ref)

    @pl.when(c == 0)
    def _():
        pair_ref[...] = jnp.zeros_like(pair_ref)

    ta, dc = q_ref.shape
    tb = k_ref.shape[1]
    d_base = c * dc

    # Lane-dense pairwise accumulation, one 128-lane bill sub-tile at a time:
    #   pair[:, sub] += sum_dd v[d] * tanh(q[:, dd, None] + k[dd, None, sub])
    # Bills live on the lane axis -> full-width EUP/VPU work, no 3-D
    # intermediate, no cross-lane reduction; each sub-tile acc stays in vregs.
    for s in range(tb // lanes):                         # static
        lo = s * lanes
        acc = jnp.zeros((ta, lanes), jnp.float32)
        for dd in range(dc):                             # static, <= 128
            qcol = q_ref[:, dd:dd + 1].astype(tanh_dtype)              # (ta, 1)
            krow = k_ref[dd:dd + 1, lo:lo + lanes].astype(tanh_dtype)  # (1, lanes)
            t = jnp.tanh(qcol + krow)                    # EUP; packed if bf16
            acc = acc + v_ref[d_base + dd] * t.astype(jnp.float32)
        pair_ref[:, lo:lo + lanes] += acc

    # After the last d-chunk: weighted bill reduction on the otherwise-idle
    # MXU, accumulated straight into the resident output block.
    @pl.when(c == pl.num_programs(2) - 1)
    def _():
        out_ref[...] += jnp.dot(pair_ref[...], y_ref[...],
                                preferred_element_type=jnp.float32)


@functools.partial(jax.jit, static_argnames=("ta", "tb_block", "tanh_dtype"))
def influence_scorer(actor_z, bill_z, bill_y, wq, wk, wv, *,
                     ta=128, tb_block=512, tanh_dtype=jnp.float32):
    """actor_z: (A, D), bill_z: (B, D), bill_y: (B,) or (B, 1).
    wq, wk: (D, D) PyTorch Linear layout (out, in); wv: (1, D).
    On v6e/v7x pass tanh_dtype=jnp.bfloat16 for ~2x EUP tanh throughput
    (validate against a correspondingly loosened tolerance)."""
    A, D = actor_z.shape
    B = bill_z.shape[0]

    # Hoisted projections (weights never enter the kernel / VMEM).
    q = (actor_z @ wq.T).astype(jnp.float32)           # (A, D)
    k_t = (wk @ bill_z.T).astype(jnp.float32)          # (D, B): bills on lanes
    v = wv.reshape(D).astype(jnp.float32)              # (D,) -> SMEM
    # Fold the 1/B mean (true B, before any padding) into the bill weights.
    y = bill_y.reshape(B, 1).astype(jnp.float32) / jnp.float32(B)

    # ---- tile / pad selection --------------------------------------------
    # Actor tiles: multiple of 8 sublanes; force >= 2 tiles when possible so
    # the "parallel" axis can split across v7x's two TensorCores.
    ta_eff = min(_round_up(ta, 8), _round_up(A, 8))
    if _round_up(A, ta_eff) // ta_eff < 2 and A > 8:
        ta_eff = _round_up((A + 1) // 2, 8)
    a_pad = _round_up(A, ta_eff)

    # Bill blocks: multiple of 128 lanes, swept in-kernel in 128-lane
    # sub-tiles (amortizes per-grid-step overhead at small D).
    lanes = 128
    tb_eff = min(_round_up(tb_block, lanes), _round_up(B, lanes))
    b_pad = _round_up(B, tb_eff)

    # Feature chunks: whole D if it fits one chunk, else 128-wide chunks on
    # an innermost grid axis (bounds the in-kernel unroll / live ranges).
    if D <= 128:
        d_pad, dc = D, D
    else:
        d_pad, dc = _round_up(D, 128), 128

    # Zero padding: padded bills have y = 0, padded features have v = 0,
    # padded actor rows are sliced off below -> exact semantics preserved.
    if a_pad != A:
        q = jnp.pad(q, ((0, a_pad - A), (0, 0)))
    if d_pad != D:
        q = jnp.pad(q, ((0, 0), (0, d_pad - D)))
        k_t = jnp.pad(k_t, ((0, d_pad - D), (0, 0)))
        v = jnp.pad(v, (0, d_pad - D))
    if b_pad != B:
        k_t = jnp.pad(k_t, ((0, 0), (0, b_pad - B)))
        y = jnp.pad(y, ((0, b_pad - B), (0, 0)))

    grid = (a_pad // ta_eff, b_pad // tb_eff, d_pad // dc)
    kernel = functools.partial(_influence_kernel,
                               tanh_dtype=tanh_dtype, lanes=lanes)

    cost = pl.CostEstimate(
        flops=5 * A * B * D + 2 * A * B,
        transcendentals=A * B * D,
        bytes_accessed=4 * (A * D + D * B + B + A),
    )

    out = pl.pallas_call(
        kernel,
        out_shape=jax.ShapeDtypeStruct((a_pad, 1), jnp.float32),
        grid=grid,
        in_specs=[
            pl.BlockSpec(memory_space=pltpu.MemorySpace.SMEM),      # v (d_pad,)
            pl.BlockSpec((ta_eff, dc), lambda i, j, c: (i, c)),     # q chunk
            pl.BlockSpec((dc, tb_eff), lambda i, j, c: (c, j)),     # k^T chunk
            pl.BlockSpec((tb_eff, 1), lambda i, j, c: (j, 0)),      # y block
        ],
        out_specs=pl.BlockSpec((ta_eff, 1), lambda i, j, c: (i, 0)),
        scratch_shapes=[pltpu.VMEM((ta_eff, tb_eff), jnp.float32)],  # pair acc
        compiler_params=pltpu.CompilerParams(
            dimension_semantics=("parallel", "arbitrary", "arbitrary")),
        cost_estimate=cost,
    )(v, q, k_t, y)
    return out[:A, 0]


def reference(actor_z, bill_z, bill_y, wq, wk, wv):
    y = bill_y.reshape(-1)
    q = actor_z @ wq.T
    k = bill_z @ wk.T
    sim = jnp.tanh(q[:, None, :] + k[None, :, :])
    pair = jnp.einsum("abd,d->ab", sim, wv[0])
    return (pair * y[None, :]).mean(axis=1)


if __name__ == "__main__":
    A, B, D = 16, 16, 32  # actors, bills, hidden dim
    key = jax.random.PRNGKey(0)
    k1, k2, k3, k4, k5, k6 = jax.random.split(key, 6)

    actor_z = jax.random.normal(k1, (A, D), dtype=jnp.float32)
    bill_z = jax.random.normal(k2, (B, D), dtype=jnp.float32)
    bill_y = jax.random.normal(k3, (B, 1), dtype=jnp.float32)

    # PyTorch Linear layout: (out, in)
    wq = jax.random.normal(k4, (D, D), dtype=jnp.float32) * 0.1
    wk = jax.random.normal(k5, (D, D), dtype=jnp.float32) * 0.1
    wv = jax.random.normal(k6, (1, D), dtype=jnp.float32) * 0.1

    ref = reference(actor_z, bill_z, bill_y, wq, wk, wv)

    # Exact-precision path (default): f32 tanh, tight tolerance.
    out = influence_scorer(actor_z, bill_z, bill_y, wq, wk, wv)
    out = jax.block_until_ready(out)
    assert out.shape == (A,)
    assert jnp.allclose(out, ref, atol=1e-5, rtol=1e-5), (out, ref)

    # Fast path for v6e/v7x: packed bf16 add + tanh (~2x EUP throughput),
    # validated at a bf16-appropriate tolerance.
    out_bf16 = influence_scorer(actor_z, bill_z, bill_y, wq, wk, wv,
                                tanh_dtype=jnp.bfloat16)
    out_bf16 = jax.block_until_ready(out_bf16)
    assert jnp.allclose(out_bf16, ref, atol=5e-2, rtol=5e-2), (out_bf16, ref)

    print("KERNEL_OK")
</pallas_src>

<mosaic_0001>
module attributes {stable_mosaic.version = 11 : i64} {
  func.func @_influence_kernel(%arg0: i32, %arg1: i32, %arg2: i32, %arg3: memref<32xf32, #tpu.memory_space<smem>>, %arg4: memref<8x32xf32, #tpu.memory_space<vmem>>, %arg5: memref<32x128xf32, #tpu.memory_space<vmem>>, %arg6: memref<128x1xf32, #tpu.memory_space<vmem>>, %arg7: memref<8x1xf32, #tpu.memory_space<vmem>>, %arg8: memref<8x128xf32, #tpu.memory_space<vmem>>) attributes {dimension_semantics = [#tpu.dimension_semantics<parallel>, #tpu.dimension_semantics<arbitrary>, #tpu.dimension_semantics<arbitrary>], iteration_bounds = array<i64: 2, 1, 1>, scalar_prefetch = 0 : i64, scratch_operands = 1 : i64, tpu.core_type = #tpu.core_type<tc>, window_params = [{transform_indices = @transform_0, window_bounds = array<i64: 32>}, {transform_indices = @transform_1, window_bounds = array<i64: 8, 32>}, {transform_indices = @transform_2, window_bounds = array<i64: 32, 128>}, {transform_indices = @transform_3, window_bounds = array<i64: 128, 1>}, {transform_indices = @transform_4, window_bounds = array<i64: 8, 1>}]} {
    %c0_i32 = arith.constant 0 : i32
    %0 = arith.cmpi eq, %arg1, %c0_i32 : i32
    %c0_i32_0 = arith.constant 0 : i32
    %1 = arith.cmpi eq, %arg2, %c0_i32_0 : i32
    %2 = arith.andi %0, %1 : i1
    %3 = arith.extui %2 : i1 to i32
    %c0_i32_1 = arith.constant 0 : i32
    %4 = arith.cmpi ne, %3, %c0_i32_1 : i32
    scf.if %4 {
      %cst_107 = arith.constant 0.000000e+00 : f32
      %400 = vector.broadcast %cst_107 : f32 to vector<8x1xf32>
      %c0_108 = arith.constant 0 : index
      %c0_109 = arith.constant 0 : index
      %401 = vector.load %arg7[%c0_108, %c0_109] : memref<8x1xf32, #tpu.memory_space<vmem>>, vector<8x1xf32>
      tpu.vector_store %arg7[%c0_108, %c0_109], %400 {strides = array<i32>} : memref<8x1xf32, #tpu.memory_space<vmem>>, vector<8x1xf32>,
    } else {
    }
    %c0_i32_2 = arith.constant 0 : i32
    %5 = arith.cmpi eq, %arg2, %c0_i32_2 : i32
    %6 = arith.extui %5 : i1 to i32
    %c0_i32_3 = arith.constant 0 : i32
    %7 = arith.cmpi ne, %6, %c0_i32_3 : i32
    scf.if %7 {
      %cst_107 = arith.constant 0.000000e+00 : f32
      %400 = vector.broadcast %cst_107 : f32 to vector<8x128xf32>
      %c0_108 = arith.constant 0 : index
      %c0_109 = arith.constant 0 : index
      %401 = vector.load %arg8[%c0_108, %c0_109] : memref<8x128xf32, #tpu.memory_space<vmem>>, vector<8x128xf32>
      tpu.vector_store %arg8[%c0_108, %c0_109], %400 {strides = array<i32>} : memref<8x128xf32, #tpu.memory_space<vmem>>, vector<8x128xf32>,
    } else {
    }
    %c32_i32 = arith.constant 32 : i32
    %8 = arith.muli %arg2, %c32_i32 : i32
    %cst = arith.constant 0.000000e+00 : f32
    %9 = vector.broadcast %cst : f32 to vector<8x128xf32>
    %c0 = arith.constant 0 : index
    %c0_4 = arith.constant 0 : index
    %10 = vector.load %arg4[%c0, %c0_4] : memref<8x32xf32, #tpu.memory_space<vmem>>, vector<8x1xf32>
    %c0_5 = arith.constant 0 : index
    %c0_6 = arith.constant 0 : index
    %11 = vector.load %arg5[%c0_5, %c0_6] : memref<32x128xf32, #tpu.memory_space<vmem>>, vector<1x128xf32>
    %12 = vector.broadcast %10 : vector<8x1xf32> to vector<8x128xf32>
    %13 = vector.broadcast %11 : vector<1x128xf32> to vector<8x128xf32>
    %14 = arith.addf %12, %13 : vector<8x128xf32>
    %15 = math.tanh %14 : vector<8x128xf32>
    %c0_i32_7 = arith.constant 0 : i32
    %16 = arith.addi %8, %c0_i32_7 : i32
    %17 = arith.index_cast %16 : i32 to index
    %18 = memref.load %arg3[%17] : memref<32xf32, #tpu.memory_space<smem>>
    %19 = vector.broadcast %18 : f32 to vector<8x128xf32>
    %20 = arith.mulf %19, %15 : vector<8x128xf32>
    %21 = arith.addf %9, %20 : vector<8x128xf32>
    %c0_8 = arith.constant 0 : index
    %c1 = arith.constant 1 : index
    %22 = vector.load %arg4[%c0_8, %c1] : memref<8x32xf32, #tpu.memory_space<vmem>>, vector<8x1xf32>
    %c1_9 = arith.constant 1 : index
    %c0_10 = arith.constant 0 : index
    %23 = vector.load %arg5[%c1_9, %c0_10] : memref<32x128xf32, #tpu.memory_space<vmem>>, vector<1x128xf32>
    %24 = vector.broadcast %22 : vector<8x1xf32> to vector<8x128xf32>
    %25 = vector.broadcast %23 : vector<1x128xf32> to vector<8x128xf32>
    %26 = arith.addf %24, %25 : vector<8x128xf32>
    %27 = math.tanh %26 : vector<8x128xf32>
    %c1_i32 = arith.constant 1 : i32
    %28 = arith.addi %8, %c1_i32 : i32
    %29 = arith.index_cast %28 : i32 to index
    %30 = memref.load %arg3[%29] : memref<32xf32, #tpu.memory_space<smem>>
    %31 = vector.broadcast %30 : f32 to vector<8x128xf32>
    %32 = arith.mulf %31, %27 : vector<8x128xf32>
    %33 = arith.addf %21, %32 : vector<8x128xf32>
    %c0_11 = arith.constant 0 : index
    %c2 = arith.constant 2 : index
    %34 = vector.load %arg4[%c0_11, %c2] : memref<8x32xf32, #tpu.memory_space<vmem>>, vector<8x1xf32>
    %c2_12 = arith.constant 2 : index
    %c0_13 = arith.constant 0 : index
    %35 = vector.load %arg5[%c2_12, %c0_13] : memref<32x128xf32, #tpu.memory_space<vmem>>, vector<1x128xf32>
    %36 = vector.broadcast %34 : vector<8x1xf32> to vector<8x128xf32>
    %37 = vector.broadcast %35 : vector<1x128xf32> to vector<8x128xf32>
    %38 = arith.addf %36, %37 : vector<8x128xf32>
    %39 = math.tanh %38 : vector<8x128xf32>
    %c2_i32 = arith.constant 2 : i32
    %40 = arith.addi %8, %c2_i32 : i32
    %41 = arith.index_cast %40 : i32 to index
    %42 = memref.load %arg3[%41] : memref<32xf32, #tpu.memory_space<smem>>
    %43 = vector.broadcast %42 : f32 to vector<8x128xf32>
    %44 = arith.mulf %43, %39 : vector<8x128xf32>
    %45 = arith.addf %33, %44 : vector<8x128xf32>
    %c0_14 = arith.constant 0 : index
    %c3 = arith.constant 3 : index
    %46 = vector.load %arg4[%c0_14, %c3] : memref<8x32xf32, #tpu.memory_space<vmem>>, vector<8x1xf32>
    %c3_15 = arith.constant 3 : index
    %c0_16 = arith.constant 0 : index
    %47 = vector.load %arg5[%c3_15, %c0_16] : memref<32x128xf32, #tpu.memory_space<vmem>>, vector<1x128xf32>
    %48 = vector.broadcast %46 : vector<8x1xf32> to vector<8x128xf32>
    %49 = vector.broadcast %47 : vector<1x128xf32> to vector<8x128xf32>
    %50 = arith.addf %48, %49 : vector<8x128xf32>
    %51 = math.tanh %50 : vector<8x128xf32>
    %c3_i32 = arith.constant 3 : i32
    %52 = arith.addi %8, %c3_i32 : i32
    %53 = arith.index_cast %52 : i32 to index
    %54 = memref.load %arg3[%53] : memref<32xf32, #tpu.memory_space<smem>>
    %55 = vector.broadcast %54 : f32 to vector<8x128xf32>
    %56 = arith.mulf %55, %51 : vector<8x128xf32>
    %57 = arith.addf %45, %56 : vector<8x128xf32>
    %c0_17 = arith.constant 0 : index
    %c4 = arith.constant 4 : index
    %58 = vector.load %arg4[%c0_17, %c4] : memref<8x32xf32, #tpu.memory_space<vmem>>, vector<8x1xf32>
    %c4_18 = arith.constant 4 : index
    %c0_19 = arith.constant 0 : index
    %59 = vector.load %arg5[%c4_18, %c0_19] : memref<32x128xf32, #tpu.memory_space<vmem>>, vector<1x128xf32>
    %60 = vector.broadcast %58 : vector<8x1xf32> to vector<8x128xf32>
    %61 = vector.broadcast %59 : vector<1x128xf32> to vector<8x128xf32>
    %62 = arith.addf %60, %61 : vector<8x128xf32>
    %63 = math.tanh %62 : vector<8x128xf32>
    %c4_i32 = arith.constant 4 : i32
    %64 = arith.addi %8, %c4_i32 : i32
    %65 = arith.index_cast %64 : i32 to index
    %66 = memref.load %arg3[%65] : memref<32xf32, #tpu.memory_space<smem>>
    %67 = vector.broadcast %66 : f32 to vector<8x128xf32>
    %68 = arith.mulf %67, %63 : vector<8x128xf32>
    %69 = arith.addf %57, %68 : vector<8x128xf32>
    %c0_20 = arith.constant 0 : index
    %c5 = arith.constant 5 : index
    %70 = vector.load %arg4[%c0_20, %c5] : memref<8x32xf32, #tpu.memory_space<vmem>>, vector<8x1xf32>
    %c5_21 = arith.constant 5 : index
    %c0_22 = arith.constant 0 : index
    %71 = vector.load %arg5[%c5_21, %c0_22] : memref<32x128xf32, #tpu.memory_space<vmem>>, vector<1x128xf32>
    %72 = vector.broadcast %70 : vector<8x1xf32> to vector<8x128xf32>
    %73 = vector.broadcast %71 : vector<1x128xf32> to vector<8x128xf32>
    %74 = arith.addf %72, %73 : vector<8x128xf32>
    %75 = math.tanh %74 : vector<8x128xf32>
    %c5_i32 = arith.constant 5 : i32
    %76 = arith.addi %8, %c5_i32 : i32
    %77 = arith.index_cast %76 : i32 to index
    %78 = memref.load %arg3[%77] : memref<32xf32, #tpu.memory_space<smem>>
    %79 = vector.broadcast %78 : f32 to vector<8x128xf32>
    %80 = arith.mulf %79, %75 : vector<8x128xf32>
    %81 = arith.addf %69, %80 : vector<8x128xf32>
    %c0_23 = arith.constant 0 : index
    %c6 = arith.constant 6 : index
    %82 = vector.load %arg4[%c0_23, %c6] : memref<8x32xf32, #tpu.memory_space<vmem>>, vector<8x1xf32>
    %c6_24 = arith.constant 6 : index
    %c0_25 = arith.constant 0 : index
    %83 = vector.load %arg5[%c6_24, %c0_25] : memref<32x128xf32, #tpu.memory_space<vmem>>, vector<1x128xf32>
    %84 = vector.broadcast %82 : vector<8x1xf32> to vector<8x128xf32>
    %85 = vector.broadcast %83 : vector<1x128xf32> to vector<8x128xf32>
    %86 = arith.addf %84, %85 : vector<8x128xf32>
    %87 = math.tanh %86 : vector<8x128xf32>
    %c6_i32 = arith.constant 6 : i32
    %88 = arith.addi %8, %c6_i32 : i32
    %89 = arith.index_cast %88 : i32 to index
    %90 = memref.load %arg3[%89] : memref<32xf32, #tpu.memory_space<smem>>
    %91 = vector.broadcast %90 : f32 to vector<8x128xf32>
    %92 = arith.mulf %91, %87 : vector<8x128xf32>
    %93 = arith.addf %81, %92 : vector<8x128xf32>
    %c0_26 = arith.constant 0 : index
    %c7 = arith.constant 7 : index
    %94 = vector.load %arg4[%c0_26, %c7] : memref<8x32xf32, #tpu.memory_space<vmem>>, vector<8x1xf32>
    %c7_27 = arith.constant 7 : index
    %c0_28 = arith.constant 0 : index
    %95 = vector.load %arg5[%c7_27, %c0_28] : memref<32x128xf32, #tpu.memory_space<vmem>>, vector<1x128xf32>
    %96 = vector.broadcast %94 : vector<8x1xf32> to vector<8x128xf32>
    %97 = vector.broadcast %95 : vector<1x128xf32> to vector<8x128xf32>
    %98 = arith.addf %96, %97 : vector<8x128xf32>
    %99 = math.tanh %98 : vector<8x128xf32>
    %c7_i32 = arith.constant 7 : i32
    %100 = arith.addi %8, %c7_i32 : i32
    %101 = arith.index_cast %100 : i32 to index
    %102 = memref.load %arg3[%101] : memref<32xf32, #tpu.memory_space<smem>>
    %103 = vector.broadcast %102 : f32 to vector<8x128xf32>
    %104 = arith.mulf %103, %99 : vector<8x128xf32>
    %105 = arith.addf %93, %104 : vector<8x128xf32>
    %c0_29 = arith.constant 0 : index
    %c8 = arith.constant 8 : index
    %106 = vector.load %arg4[%c0_29, %c8] : memref<8x32xf32, #tpu.memory_space<vmem>>, vector<8x1xf32>
    %c8_30 = arith.constant 8 : index
    %c0_31 = arith.constant 0 : index
    %107 = vector.load %arg5[%c8_30, %c0_31] : memref<32x128xf32, #tpu.memory_space<vmem>>, vector<1x128xf32>
    %108 = vector.broadcast %106 : vector<8x1xf32> to vector<8x128xf32>
    %109 = vector.broadcast %107 : vector<1x128xf32> to vector<8x128xf32>
    %110 = arith.addf %108, %109 : vector<8x128xf32>
    %111 = math.tanh %110 : vector<8x128xf32>
    %c8_i32 = arith.constant 8 : i32
    %112 = arith.addi %8, %c8_i32 : i32
    %113 = arith.index_cast %112 : i32 to index
    %114 = memref.load %arg3[%113] : memref<32xf32, #tpu.memory_space<smem>>
    %115 = vector.broadcast %114 : f32 to vector<8x128xf32>
    %116 = arith.mulf %115, %111 : vector<8x128xf32>
    %117 = arith.addf %105, %116 : vector<8x128xf32>
    %c0_32 = arith.constant 0 : index
    %c9 = arith.constant 9 : index
    %118 = vector.load %arg4[%c0_32, %c9] : memref<8x32xf32, #tpu.memory_space<vmem>>, vector<8x1xf32>
    %c9_33 = arith.constant 9 : index
    %c0_34 = arith.constant 0 : index
    %119 = vector.load %arg5[%c9_33, %c0_34] : memref<32x128xf32, #tpu.memory_space<vmem>>, vector<1x128xf32>
    %120 = vector.broadcast %118 : vector<8x1xf32> to vector<8x128xf32>
    %121 = vector.broadcast %119 : vector<1x128xf32> to vector<8x128xf32>
    %122 = arith.addf %120, %121 : vector<8x128xf32>
    %123 = math.tanh %122 : vector<8x128xf32>
    %c9_i32 = arith.constant 9 : i32
    %124 = arith.addi %8, %c9_i32 : i32
    %125 = arith.index_cast %124 : i32 to index
    %126 = memref.load %arg3[%125] : memref<32xf32, #tpu.memory_space<smem>>
    %127 = vector.broadcast %126 : f32 to vector<8x128xf32>
    %128 = arith.mulf %127, %123 : vector<8x128xf32>
    %129 = arith.addf %117, %128 : vector<8x128xf32>
    %c0_35 = arith.constant 0 : index
    %c10 = arith.constant 10 : index
    %130 = vector.load %arg4[%c0_35, %c10] : memref<8x32xf32, #tpu.memory_space<vmem>>, vector<8x1xf32>
    %c10_36 = arith.constant 10 : index
    %c0_37 = arith.constant 0 : index
    %131 = vector.load %arg5[%c10_36, %c0_37] : memref<32x128xf32, #tpu.memory_space<vmem>>, vector<1x128xf32>
    %132 = vector.broadcast %130 : vector<8x1xf32> to vector<8x128xf32>
    %133 = vector.broadcast %131 : vector<1x128xf32> to vector<8x128xf32>
    %134 = arith.addf %132, %133 : vector<8x128xf32>
    %135 = math.tanh %134 : vector<8x128xf32>
    %c10_i32 = arith.constant 10 : i32
    %136 = arith.addi %8, %c10_i32 : i32
    %137 = arith.index_cast %136 : i32 to index
    %138 = memref.load %arg3[%137] : memref<32xf32, #tpu.memory_space<smem>>
    %139 = vector.broadcast %138 : f32 to vector<8x128xf32>
    %140 = arith.mulf %139, %135 : vector<8x128xf32>
    %141 = arith.addf %129, %140 : vector<8x128xf32>
    %c0_38 = arith.constant 0 : index
    %c11 = arith.constant 11 : index
    %142 = vector.load %arg4[%c0_38, %c11] : memref<8x32xf32, #tpu.memory_space<vmem>>, vector<8x1xf32>
    %c11_39 = arith.constant 11 : index
    %c0_40 = arith.constant 0 : index
    %143 = vector.load %arg5[%c11_39, %c0_40] : memref<32x128xf32, #tpu.memory_space<vmem>>, vector<1x128xf32>
    %144 = vector.broadcast %142 : vector<8x1xf32> to vector<8x128xf32>
    %145 = vector.broadcast %143 : vector<1x128xf32> to vector<8x128xf32>
    %146 = arith.addf %144, %145 : vector<8x128xf32>
    %147 = math.tanh %146 : vector<8x128xf32>
    %c11_i32 = arith.constant 11 : i32
    %148 = arith.addi %8, %c11_i32 : i32
    %149 = arith.index_cast %148 : i32 to index
    %150 = memref.load %arg3[%149] : memref<32xf32, #tpu.memory_space<smem>>
    %151 = vector.broadcast %150 : f32 to vector<8x128xf32>
    %152 = arith.mulf %151, %147 : vector<8x128xf32>
    %153 = arith.addf %141, %152 : vector<8x128xf32>
    %c0_41 = arith.constant 0 : index
    %c12 = arith.constant 12 : index
    %154 = vector.load %arg4[%c0_41, %c12] : memref<8x32xf32, #tpu.memory_space<vmem>>, vector<8x1xf32>
    %c12_42 = arith.constant 12 : index
    %c0_43 = arith.constant 0 : index
    %155 = vector.load %arg5[%c12_42, %c0_43] : memref<32x128xf32, #tpu.memory_space<vmem>>, vector<1x128xf32>
    %156 = vector.broadcast %154 : vector<8x1xf32> to vector<8x128xf32>
    %157 = vector.broadcast %155 : vector<1x128xf32> to vector<8x128xf32>
    %158 = arith.addf %156, %157 : vector<8x128xf32>
    %159 = math.tanh %158 : vector<8x128xf32>
    %c12_i32 = arith.constant 12 : i32
    %160 = arith.addi %8, %c12_i32 : i32
    %161 = arith.index_cast %160 : i32 to index
    %162 = memref.load %arg3[%161] : memref<32xf32, #tpu.memory_space<smem>>
    %163 = vector.broadcast %162 : f32 to vector<8x128xf32>
    %164 = arith.mulf %163, %159 : vector<8x128xf32>
    %165 = arith.addf %153, %164 : vector<8x128xf32>
    %c0_44 = arith.constant 0 : index
    %c13 = arith.constant 13 : index
    %166 = vector.load %arg4[%c0_44, %c13] : memref<8x32xf32, #tpu.memory_space<vmem>>, vector<8x1xf32>
    %c13_45 = arith.constant 13 : index
    %c0_46 = arith.constant 0 : index
    %167 = vector.load %arg5[%c13_45, %c0_46] : memref<32x128xf32, #tpu.memory_space<vmem>>, vector<1x128xf32>
    %168 = vector.broadcast %166 : vector<8x1xf32> to vector<8x128xf32>
    %169 = vector.broadcast %167 : vector<1x128xf32> to vector<8x128xf32>
    %170 = arith.addf %168, %169 : vector<8x128xf32>
    %171 = math.tanh %170 : vector<8x128xf32>
    %c13_i32 = arith.constant 13 : i32
    %172 = arith.addi %8, %c13_i32 : i32
    %173 = arith.index_cast %172 : i32 to index
    %174 = memref.load %arg3[%173] : memref<32xf32, #tpu.memory_space<smem>>
    %175 = vector.broadcast %174 : f32 to vector<8x128xf32>
    %176 = arith.mulf %175, %171 : vector<8x128xf32>
    %177 = arith.addf %165, %176 : vector<8x128xf32>
    %c0_47 = arith.constant 0 : index
    %c14 = arith.constant 14 : index
    %178 = vector.load %arg4[%c0_47, %c14] : memref<8x32xf32, #tpu.memory_space<vmem>>, vector<8x1xf32>
    %c14_48 = arith.constant 14 : index
    %c0_49 = arith.constant 0 : index
    %179 = vector.load %arg5[%c14_48, %c0_49] : memref<32x128xf32, #tpu.memory_space<vmem>>, vector<1x128xf32>
    %180 = vector.broadcast %178 : vector<8x1xf32> to vector<8x128xf32>
    %181 = vector.broadcast %179 : vector<1x128xf32> to vector<8x128xf32>
    %182 = arith.addf %180, %181 : vector<8x128xf32>
    %183 = math.tanh %182 : vector<8x128xf32>
    %c14_i32 = arith.constant 14 : i32
    %184 = arith.addi %8, %c14_i32 : i32
    %185 = arith.index_cast %184 : i32 to index
    %186 = memref.load %arg3[%185] : memref<32xf32, #tpu.memory_space<smem>>
    %187 = vector.broadcast %186 : f32 to vector<8x128xf32>
    %188 = arith.mulf %187, %183 : vector<8x128xf32>
    %189 = arith.addf %177, %188 : vector<8x128xf32>
    %c0_50 = arith.constant 0 : index
    %c15 = arith.constant 15 : index
    %190 = vector.load %arg4[%c0_50, %c15] : memref<8x32xf32, #tpu.memory_space<vmem>>, vector<8x1xf32>
    %c15_51 = arith.constant 15 : index
    %c0_52 = arith.constant 0 : index
    %191 = vector.load %arg5[%c15_51, %c0_52] : memref<32x128xf32, #tpu.memory_space<vmem>>, vector<1x128xf32>
    %192 = vector.broadcast %190 : vector<8x1xf32> to vector<8x128xf32>
    %193 = vector.broadcast %191 : vector<1x128xf32> to vector<8x128xf32>
    %194 = arith.addf %192, %193 : vector<8x128xf32>
    %195 = math.tanh %194 : vector<8x128xf32>
    %c15_i32 = arith.constant 15 : i32
    %196 = arith.addi %8, %c15_i32 : i32
    %197 = arith.index_cast %196 : i32 to index
    %198 = memref.load %arg3[%197] : memref<32xf32, #tpu.memory_space<smem>>
    %199 = vector.broadcast %198 : f32 to vector<8x128xf32>
    %200 = arith.mulf %199, %195 : vector<8x128xf32>
    %201 = arith.addf %189, %200 : vector<8x128xf32>
    %c0_53 = arith.constant 0 : index
    %c16 = arith.constant 16 : index
    %202 = vector.load %arg4[%c0_53, %c16] : memref<8x32xf32, #tpu.memory_space<vmem>>, vector<8x1xf32>
    %c16_54 = arith.constant 16 : index
    %c0_55 = arith.constant 0 : index
    %203 = vector.load %arg5[%c16_54, %c0_55] : memref<32x128xf32, #tpu.memory_space<vmem>>, vector<1x128xf32>
    %204 = vector.broadcast %202 : vector<8x1xf32> to vector<8x128xf32>
    %205 = vector.broadcast %203 : vector<1x128xf32> to vector<8x128xf32>
    %206 = arith.addf %204, %205 : vector<8x128xf32>
    %207 = math.tanh %206 : vector<8x128xf32>
    %c16_i32 = arith.constant 16 : i32
    %208 = arith.addi %8, %c16_i32 : i32
    %209 = arith.index_cast %208 : i32 to index
    %210 = memref.load %arg3[%209] : memref<32xf32, #tpu.memory_space<smem>>
    %211 = vector.broadcast %210 : f32 to vector<8x128xf32>
    %212 = arith.mulf %211, %207 : vector<8x128xf32>
    %213 = arith.addf %201, %212 : vector<8x128xf32>
    %c0_56 = arith.constant 0 : index
    %c17 = arith.constant 17 : index
    %214 = vector.load %arg4[%c0_56, %c17] : memref<8x32xf32, #tpu.memory_space<vmem>>, vector<8x1xf32>
    %c17_57 = arith.constant 17 : index
    %c0_58 = arith.constant 0 : index
    %215 = vector.load %arg5[%c17_57, %c0_58] : memref<32x128xf32, #tpu.memory_space<vmem>>, vector<1x128xf32>
    %216 = vector.broadcast %214 : vector<8x1xf32> to vector<8x128xf32>
    %217 = vector.broadcast %215 : vector<1x128xf32> to vector<8x128xf32>
    %218 = arith.addf %216, %217 : vector<8x128xf32>
    %219 = math.tanh %218 : vector<8x128xf32>
    %c17_i32 = arith.constant 17 : i32
    %220 = arith.addi %8, %c17_i32 : i32
    %221 = arith.index_cast %220 : i32 to index
    %222 = memref.load %arg3[%221] : memref<32xf32, #tpu.memory_space<smem>>
    %223 = vector.broadcast %222 : f32 to vector<8x128xf32>
    %224 = arith.mulf %223, %219 : vector<8x128xf32>
    %225 = arith.addf %213, %224 : vector<8x128xf32>
    %c0_59 = arith.constant 0 : index
    %c18 = arith.constant 18 : index
    %226 = vector.load %arg4[%c0_59, %c18] : memref<8x32xf32, #tpu.memory_space<vmem>>, vector<8x1xf32>
    %c18_60 = arith.constant 18 : index
    %c0_61 = arith.constant 0 : index
    %227 = vector.load %arg5[%c18_60, %c0_61] : memref<32x128xf32, #tpu.memory_space<vmem>>, vector<1x128xf32>
    %228 = vector.broadcast %226 : vector<8x1xf32> to vector<8x128xf32>
    %229 = vector.broadcast %227 : vector<1x128xf32> to vector<8x128xf32>
    %230 = arith.addf %228, %229 : vector<8x128xf32>
    %231 = math.tanh %230 : vector<8x128xf32>
    %c18_i32 = arith.constant 18 : i32
    %232 = arith.addi %8, %c18_i32 : i32
    %233 = arith.index_cast %232 : i32 to index
    %234 = memref.load %arg3[%233] : memref<32xf32, #tpu.memory_space<smem>>
    %235 = vector.broadcast %234 : f32 to vector<8x128xf32>
    %236 = arith.mulf %235, %231 : vector<8x128xf32>
    %237 = arith.addf %225, %236 : vector<8x128xf32>
    %c0_62 = arith.constant 0 : index
    %c19 = arith.constant 19 : index
    %238 = vector.load %arg4[%c0_62, %c19] : memref<8x32xf32, #tpu.memory_space<vmem>>, vector<8x1xf32>
    %c19_63 = arith.constant 19 : index
    %c0_64 = arith.constant 0 : index
    %239 = vector.load %arg5[%c19_63, %c0_64] : memref<32x128xf32, #tpu.memory_space<vmem>>, vector<1x128xf32>
    %240 = vector.broadcast %238 : vector<8x1xf32> to vector<8x128xf32>
    %241 = vector.broadcast %239 : vector<1x128xf32> to vector<8x128xf32>
    %242 = arith.addf %240, %241 : vector<8x128xf32>
    %243 = math.tanh %242 : vector<8x128xf32>
    %c19_i32 = arith.constant 19 : i32
    %244 = arith.addi %8, %c19_i32 : i32
    %245 = arith.index_cast %244 : i32 to index
    %246 = memref.load %arg3[%245] : memref<32xf32, #tpu.memory_space<smem>>
    %247 = vector.broadcast %246 : f32 to vector<8x128xf32>
    %248 = arith.mulf %247, %243 : vector<8x128xf32>
    %249 = arith.addf %237, %248 : vector<8x128xf32>
    %c0_65 = arith.constant 0 : index
    %c20 = arith.constant 20 : index
    %250 = vector.load %arg4[%c0_65, %c20] : memref<8x32xf32, #tpu.memory_space<vmem>>, vector<8x1xf32>
    %c20_66 = arith.constant 20 : index
    %c0_67 = arith.constant 0 : index
    %251 = vector.load %arg5[%c20_66, %c0_67] : memref<32x128xf32, #tpu.memory_space<vmem>>, vector<1x128xf32>
    %252 = vector.broadcast %250 : vector<8x1xf32> to vector<8x128xf32>
    %253 = vector.broadcast %251 : vector<1x128xf32> to vector<8x128xf32>
    %254 = arith.addf %252, %253 : vector<8x128xf32>
    %255 = math.tanh %254 : vector<8x128xf32>
    %c20_i32 = arith.constant 20 : i32
    %256 = arith.addi %8, %c20_i32 : i32
    %257 = arith.index_cast %256 : i32 to index
    %258 = memref.load %arg3[%257] : memref<32xf32, #tpu.memory_space<smem>>
    %259 = vector.broadcast %258 : f32 to vector<8x128xf32>
    %260 = arith.mulf %259, %255 : vector<8x128xf32>
    %261 = arith.addf %249, %260 : vector<8x128xf32>
    %c0_68 = arith.constant 0 : index
    %c21 = arith.constant 21 : index
    %262 = vector.load %arg4[%c0_68, %c21] : memref<8x32xf32, #tpu.memory_space<vmem>>, vector<8x1xf32>
    %c21_69 = arith.constant 21 : index
    %c0_70 = arith.constant 0 : index
    %263 = vector.load %arg5[%c21_69, %c0_70] : memref<32x128xf32, #tpu.memory_space<vmem>>, vector<1x128xf32>
    %264 = vector.broadcast %262 : vector<8x1xf32> to vector<8x128xf32>
    %265 = vector.broadcast %263 : vector<1x128xf32> to vector<8x128xf32>
    %266 = arith.addf %264, %265 : vector<8x128xf32>
    %267 = math.tanh %266 : vector<8x128xf32>
    %c21_i32 = arith.constant 21 : i32
    %268 = arith.addi %8, %c21_i32 : i32
    %269 = arith.index_cast %268 : i32 to index
    %270 = memref.load %arg3[%269] : memref<32xf32, #tpu.memory_space<smem>>
    %271 = vector.broadcast %270 : f32 to vector<8x128xf32>
    %272 = arith.mulf %271, %267 : vector<8x128xf32>
    %273 = arith.addf %261, %272 : vector<8x128xf32>
    %c0_71 = arith.constant 0 : index
    %c22 = arith.constant 22 : index
    %274 = vector.load %arg4[%c0_71, %c22] : memref<8x32xf32, #tpu.memory_space<vmem>>, vector<8x1xf32>
    %c22_72 = arith.constant 22 : index
    %c0_73 = arith.constant 0 : index
    %275 = vector.load %arg5[%c22_72, %c0_73] : memref<32x128xf32, #tpu.memory_space<vmem>>, vector<1x128xf32>
    %276 = vector.broadcast %274 : vector<8x1xf32> to vector<8x128xf32>
    %277 = vector.broadcast %275 : vector<1x128xf32> to vector<8x128xf32>
    %278 = arith.addf %276, %277 : vector<8x128xf32>
    %279 = math.tanh %278 : vector<8x128xf32>
    %c22_i32 = arith.constant 22 : i32
    %280 = arith.addi %8, %c22_i32 : i32
    %281 = arith.index_cast %280 : i32 to index
    %282 = memref.load %arg3[%281] : memref<32xf32, #tpu.memory_space<smem>>
    %283 = vector.broadcast %282 : f32 to vector<8x128xf32>
    %284 = arith.mulf %283, %279 : vector<8x128xf32>
    %285 = arith.addf %273, %284 : vector<8x128xf32>
    %c0_74 = arith.constant 0 : index
    %c23 = arith.constant 23 : index
    %286 = vector.load %arg4[%c0_74, %c23] : memref<8x32xf32, #tpu.memory_space<vmem>>, vector<8x1xf32>
    %c23_75 = arith.constant 23 : index
    %c0_76 = arith.constant 0 : index
    %287 = vector.load %arg5[%c23_75, %c0_76] : memref<32x128xf32, #tpu.memory_space<vmem>>, vector<1x128xf32>
    %288 = vector.broadcast %286 : vector<8x1xf32> to vector<8x128xf32>
    %289 = vector.broadcast %287 : vector<1x128xf32> to vector<8x128xf32>
    %290 = arith.addf %288, %289 : vector<8x128xf32>
    %291 = math.tanh %290 : vector<8x128xf32>
    %c23_i32 = arith.constant 23 : i32
    %292 = arith.addi %8, %c23_i32 : i32
    %293 = arith.index_cast %292 : i32 to index
    %294 = memref.load %arg3[%293] : memref<32xf32, #tpu.memory_space<smem>>
    %295 = vector.broadcast %294 : f32 to vector<8x128xf32>
    %296 = arith.mulf %295, %291 : vector<8x128xf32>
    %297 = arith.addf %285, %296 : vector<8x128xf32>
    %c0_77 = arith.constant 0 : index
    %c24 = arith.constant 24 : index
    %298 = vector.load %arg4[%c0_77, %c24] : memref<8x32xf32, #tpu.memory_space<vmem>>, vector<8x1xf32>
    %c24_78 = arith.constant 24 : index
    %c0_79 = arith.constant 0 : index
    %299 = vector.load %arg5[%c24_78, %c0_79] : memref<32x128xf32, #tpu.memory_space<vmem>>, vector<1x128xf32>
    %300 = vector.broadcast %298 : vector<8x1xf32> to vector<8x128xf32>
    %301 = vector.broadcast %299 : vector<1x128xf32> to vector<8x128xf32>
    %302 = arith.addf %300, %301 : vector<8x128xf32>
    %303 = math.tanh %302 : vector<8x128xf32>
    %c24_i32 = arith.constant 24 : i32
    %304 = arith.addi %8, %c24_i32 : i32
    %305 = arith.index_cast %304 : i32 to index
    %306 = memref.load %arg3[%305] : memref<32xf32, #tpu.memory_space<smem>>
    %307 = vector.broadcast %306 : f32 to vector<8x128xf32>
    %308 = arith.mulf %307, %303 : vector<8x128xf32>
    %309 = arith.addf %297, %308 : vector<8x128xf32>
    %c0_80 = arith.constant 0 : index
    %c25 = arith.constant 25 : index
    %310 = vector.load %arg4[%c0_80, %c25] : memref<8x32xf32, #tpu.memory_space<vmem>>, vector<8x1xf32>
    %c25_81 = arith.constant 25 : index
    %c0_82 = arith.constant 0 : index
    %311 = vector.load %arg5[%c25_81, %c0_82] : memref<32x128xf32, #tpu.memory_space<vmem>>, vector<1x128xf32>
    %312 = vector.broadcast %310 : vector<8x1xf32> to vector<8x128xf32>
    %313 = vector.broadcast %311 : vector<1x128xf32> to vector<8x128xf32>
    %314 = arith.addf %312, %313 : vector<8x128xf32>
    %315 = math.tanh %314 : vector<8x128xf32>
    %c25_i32 = arith.constant 25 : i32
    %316 = arith.addi %8, %c25_i32 : i32
    %317 = arith.index_cast %316 : i32 to index
    %318 = memref.load %arg3[%317] : memref<32xf32, #tpu.memory_space<smem>>
    %319 = vector.broadcast %318 : f32 to vector<8x128xf32>
    %320 = arith.mulf %319, %315 : vector<8x128xf32>
    %321 = arith.addf %309, %320 : vector<8x128xf32>
    %c0_83 = arith.constant 0 : index
    %c26 = arith.constant 26 : index
    %322 = vector.load %arg4[%c0_83, %c26] : memref<8x32xf32, #tpu.memory_space<vmem>>, vector<8x1xf32>
    %c26_84 = arith.constant 26 : index
    %c0_85 = arith.constant 0 : index
    %323 = vector.load %arg5[%c26_84, %c0_85] : memref<32x128xf32, #tpu.memory_space<vmem>>, vector<1x128xf32>
    %324 = vector.broadcast %322 : vector<8x1xf32> to vector<8x128xf32>
    %325 = vector.broadcast %323 : vector<1x128xf32> to vector<8x128xf32>
    %326 = arith.addf %324, %325 : vector<8x128xf32>
    %327 = math.tanh %326 : vector<8x128xf32>
    %c26_i32 = arith.constant 26 : i32
    %328 = arith.addi %8, %c26_i32 : i32
    %329 = arith.index_cast %328 : i32 to index
    %330 = memref.load %arg3[%329] : memref<32xf32, #tpu.memory_space<smem>>
    %331 = vector.broadcast %330 : f32 to vector<8x128xf32>
    %332 = arith.mulf %331, %327 : vector<8x128xf32>
    %333 = arith.addf %321, %332 : vector<8x128xf32>
    %c0_86 = arith.constant 0 : index
    %c27 = arith.constant 27 : index
    %334 = vector.load %arg4[%c0_86, %c27] : memref<8x32xf32, #tpu.memory_space<vmem>>, vector<8x1xf32>
    %c27_87 = arith.constant 27 : index
    %c0_88 = arith.constant 0 : index
    %335 = vector.load %arg5[%c27_87, %c0_88] : memref<32x128xf32, #tpu.memory_space<vmem>>, vector<1x128xf32>
    %336 = vector.broadcast %334 : vector<8x1xf32> to vector<8x128xf32>
    %337 = vector.broadcast %335 : vector<1x128xf32> to vector<8x128xf32>
    %338 = arith.addf %336, %337 : vector<8x128xf32>
    %339 = math.tanh %338 : vector<8x128xf32>
    %c27_i32 = arith.constant 27 : i32
    %340 = arith.addi %8, %c27_i32 : i32
    %341 = arith.index_cast %340 : i32 to index
    %342 = memref.load %arg3[%341] : memref<32xf32, #tpu.memory_space<smem>>
    %343 = vector.broadcast %342 : f32 to vector<8x128xf32>
    %344 = arith.mulf %343, %339 : vector<8x128xf32>
    %345 = arith.addf %333, %344 : vector<8x128xf32>
    %c0_89 = arith.constant 0 : index
    %c28 = arith.constant 28 : index
    %346 = vector.load %arg4[%c0_89, %c28] : memref<8x32xf32, #tpu.memory_space<vmem>>, vector<8x1xf32>
    %c28_90 = arith.constant 28 : index
    %c0_91 = arith.constant 0 : index
    %347 = vector.load %arg5[%c28_90, %c0_91] : memref<32x128xf32, #tpu.memory_space<vmem>>, vector<1x128xf32>
    %348 = vector.broadcast %346 : vector<8x1xf32> to vector<8x128xf32>
    %349 = vector.broadcast %347 : vector<1x128xf32> to vector<8x128xf32>
    %350 = arith.addf %348, %349 : vector<8x128xf32>
    %351 = math.tanh %350 : vector<8x128xf32>
    %c28_i32 = arith.constant 28 : i32
    %352 = arith.addi %8, %c28_i32 : i32
    %353 = arith.index_cast %352 : i32 to index
    %354 = memref.load %arg3[%353] : memref<32xf32, #tpu.memory_space<smem>>
    %355 = vector.broadcast %354 : f32 to vector<8x128xf32>
    %356 = arith.mulf %355, %351 : vector<8x128xf32>
    %357 = arith.addf %345, %356 : vector<8x128xf32>
    %c0_92 = arith.constant 0 : index
    %c29 = arith.constant 29 : index
    %358 = vector.load %arg4[%c0_92, %c29] : memref<8x32xf32, #tpu.memory_space<vmem>>, vector<8x1xf32>
    %c29_93 = arith.constant 29 : index
    %c0_94 = arith.constant 0 : index
    %359 = vector.load %arg5[%c29_93, %c0_94] : memref<32x128xf32, #tpu.memory_space<vmem>>, vector<1x128xf32>
    %360 = vector.broadcast %358 : vector<8x1xf32> to vector<8x128xf32>
    %361 = vector.broadcast %359 : vector<1x128xf32> to vector<8x128xf32>
    %362 = arith.addf %360, %361 : vector<8x128xf32>
    %363 = math.tanh %362 : vector<8x128xf32>
    %c29_i32 = arith.constant 29 : i32
    %364 = arith.addi %8, %c29_i32 : i32
    %365 = arith.index_cast %364 : i32 to index
    %366 = memref.load %arg3[%365] : memref<32xf32, #tpu.memory_space<smem>>
    %367 = vector.broadcast %366 : f32 to vector<8x128xf32>
    %368 = arith.mulf %367, %363 : vector<8x128xf32>
    %369 = arith.addf %357, %368 : vector<8x128xf32>
    %c0_95 = arith.constant 0 : index
    %c30 = arith.constant 30 : index
    %370 = vector.load %arg4[%c0_95, %c30] : memref<8x32xf32, #tpu.memory_space<vmem>>, vector<8x1xf32>
    %c30_96 = arith.constant 30 : index
    %c0_97 = arith.constant 0 : index
    %371 = vector.load %arg5[%c30_96, %c0_97] : memref<32x128xf32, #tpu.memory_space<vmem>>, vector<1x128xf32>
    %372 = vector.broadcast %370 : vector<8x1xf32> to vector<8x128xf32>
    %373 = vector.broadcast %371 : vector<1x128xf32> to vector<8x128xf32>
    %374 = arith.addf %372, %373 : vector<8x128xf32>
    %375 = math.tanh %374 : vector<8x128xf32>
    %c30_i32 = arith.constant 30 : i32
    %376 = arith.addi %8, %c30_i32 : i32
    %377 = arith.index_cast %376 : i32 to index
    %378 = memref.load %arg3[%377] : memref<32xf32, #tpu.memory_space<smem>>
    %379 = vector.broadcast %378 : f32 to vector<8x128xf32>
    %380 = arith.mulf %379, %375 : vector<8x128xf32>
    %381 = arith.addf %369, %380 : vector<8x128xf32>
    %c0_98 = arith.constant 0 : index
    %c31 = arith.constant 31 : index
    %382 = vector.load %arg4[%c0_98, %c31] : memref<8x32xf32, #tpu.memory_space<vmem>>, vector<8x1xf32>
    %c31_99 = arith.constant 31 : index
    %c0_100 = arith.constant 0 : index
    %383 = vector.load %arg5[%c31_99, %c0_100] : memref<32x128xf32, #tpu.memory_space<vmem>>, vector<1x128xf32>
    %384 = vector.broadcast %382 : vector<8x1xf32> to vector<8x128xf32>
    %385 = vector.broadcast %383 : vector<1x128xf32> to vector<8x128xf32>
    %386 = arith.addf %384, %385 : vector<8x128xf32>
    %387 = math.tanh %386 : vector<8x128xf32>
    %c31_i32 = arith.constant 31 : i32
    %388 = arith.addi %8, %c31_i32 : i32
    %389 = arith.index_cast %388 : i32 to index
    %390 = memref.load %arg3[%389] : memref<32xf32, #tpu.memory_space<smem>>
    %391 = vector.broadcast %390 : f32 to vector<8x128xf32>
    %392 = arith.mulf %391, %387 : vector<8x128xf32>
    %393 = arith.addf %381, %392 : vector<8x128xf32>
    %c0_101 = arith.constant 0 : index
    %c0_102 = arith.constant 0 : index
    %394 = vector.load %arg8[%c0_101, %c0_102] : memref<8x128xf32, #tpu.memory_space<vmem>>, vector<8x128xf32>
    %395 = arith.addf %394, %393 : vector<8x128xf32>
    %c0_103 = arith.constant 0 : index
    %c0_104 = arith.constant 0 : index
    %396 = vector.load %arg8[%c0_103, %c0_104] : memref<8x128xf32, #tpu.memory_space<vmem>>, vector<8x128xf32>
    tpu.vector_store %arg8[%c0_103, %c0_104], %395 {strides = array<i32>} : memref<8x128xf32, #tpu.memory_space<vmem>>, vector<8x128xf32>,
    %c0_i32_105 = arith.constant 0 : i32
    %397 = arith.cmpi eq, %arg2, %c0_i32_105 : i32
    %398 = arith.extui %397 : i1 to i32
    %c0_i32_106 = arith.constant 0 : i32
    %399 = arith.cmpi ne, %398, %c0_i32_106 : i32
    scf.if %399 {
      %c0_107 = arith.constant 0 : index
      %c0_108 = arith.constant 0 : index
      %400 = vector.load %arg7[%c0_107, %c0_108] : memref<8x1xf32, #tpu.memory_space<vmem>>, vector<8x1xf32>
      %c0_109 = arith.constant 0 : index
      %c0_110 = arith.constant 0 : index
      %401 = vector.load %arg8[%c0_109, %c0_110] : memref<8x128xf32, #tpu.memory_space<vmem>>, vector<8x128xf32>
      %c0_111 = arith.constant 0 : index
      %c0_112 = arith.constant 0 : index
      %402 = vector.load %arg6[%c0_111, %c0_112] : memref<128x1xf32, #tpu.memory_space<vmem>>, vector<128x1xf32>
      %cst_113 = arith.constant dense<0.000000e+00> : vector<8x1xf32>
      %403 = tpu.matmul %401, %402, %cst_113 {dimension_numbers = #tpu.dot_dimension_numbers<[1], [0], [0], [1], [0, 0, 1, 1], [], []>} : vector<8x128xf32>, vector<128x1xf32>, vector<8x1xf32> -> vector<8x1xf32>
      %404 = arith.addf %400, %403 : vector<8x1xf32>
      %c0_114 = arith.constant 0 : index
      %c0_115 = arith.constant 0 : index
      %405 = vector.load %arg7[%c0_114, %c0_115] : memref<8x1xf32, #tpu.memory_space<vmem>>, vector<8x1xf32>
      tpu.vector_store %arg7[%c0_114, %c0_115], %404 {strides = array<i32>} : memref<8x1xf32, #tpu.memory_space<vmem>>, vector<8x1xf32>,
    } else {
    }
    return
  }
  func.func @transform_0(%arg0: i32, %arg1: i32, %arg2: i32) -> i32 {
    %c0_i32 = arith.constant 0 : i32
    %c0_i32_0 = arith.constant 0 : i32
    return %c0_i32 : i32
  }
  func.func @transform_1(%arg0: i32, %arg1: i32, %arg2: i32) -> (i32, i32) {
    %c0_i32 = arith.constant 0 : i32
    return %arg0, %arg2 : i32, i32
  }
  func.func @transform_2(%arg0: i32, %arg1: i32, %arg2: i32) -> (i32, i32) {
    %c0_i32 = arith.constant 0 : i32
    return %arg2, %arg1 : i32, i32
  }
  func.func @transform_3(%arg0: i32, %arg1: i32, %arg2: i32) -> (i32, i32) {
    %c0_i32 = arith.constant 0 : i32
    %c0_i32_0 = arith.constant 0 : i32
    return %arg1, %c0_i32 : i32, i32
  }
  func.func @transform_4(%arg0: i32, %arg1: i32, %arg2: i32) -> (i32, i32) {
    %c0_i32 = arith.constant 0 : i32
    %c0_i32_0 = arith.constant 0 : i32
    return %arg0, %c0_i32 : i32, i32
  }
}

</mosaic_0001>

<bundles_post_ra>
// kernel: influence_scorer.1
= control target key start
LH: loop header
LB: loop body
LE: loop exit
PB: predicated region body
PF: predicated region fallthrough
CT: control target
= control target key end

     0   :  { %9 = vsyncpa [#allocation4], 0  ;;  %s1425_s15 = smov 0   ;;  %s1427_s16 = smov 0   ;;  %s1709_s0 = inlined_call_operand.vmem [shape: f32[32], index: 0, kind: input, shape index: {}]   ;;  %s1710_s1 = inlined_call_operand.vmem [shape: f32[16,32], index: 1, kind: input, shape index: {}]   ;;  %s1711_s2 = inlined_call_operand.vmem [shape: f32[32,128], index: 2, kind: input, shape index: {}]   ;;  %s1712_s3 = inlined_call_operand.vmem [shape: f32[128,1], index: 3, kind: input, shape index: {}]   ;;  %s1713_s4 = inlined_call_operand.vmem [shape: f32[16,1], index: 4, kind: output, shape index: {}]  }
   0x1   :  { %s1429_s17 = smov 0  }
   0x2 LB: > { %s1028_s18 = sadd.s32 4294967295, %s1363_s17   ;;  %s34_s19 = sadd.s32 1, %s1359_s16  ;;  %s1363_s17 = sphi %s1429_s17, %s15_s17   ;;  %s1359_s16 = sphi %s1427_s16, %s1717_s16   ;;  %s1355_s15 = sphi %s1425_s15, %s1716_s15  }
   0x3   : > { %p36_p0 = scmp.ge.s32.totalorder %s34_s19, 2  ;;  %p1030_p1 = scmp.ge.s32.totalorder %s1363_s17, 1 }
   0x4   : > { %p168_p2 = scmp.lt.s32.totalorder %s1363_s17, 3  ;;  %p1450_p4 = scmp.eq.s32.totalorder %s1028_s18, 0 }
   0x5   : > { %s1719_s19 = smov (%p36_p0, %s34_s19), 0  ;;  %s181_s24 = sshll.u32 %s1709_s0, 4  ;;  %s182_s24 = int_to_ptr.vmem [resolvable:$true] %s181_s24 }
   0x6   : > { %p1446_p3 = pnand %p1030_p1, %p168_p2  ;;  %s1322_s25 = scalar_lea.vmem %s182_s24, 16 }
   0x7   : > { %p1323_p7 = scmp.ne.s32.totalorder %s182_s24, %s1322_s25  ;;  %p1330_p11 = scmp.lt.s32.totalorder %s182_s24, %s182_s24 }
   0x8   : > { %p1160_p5 = pneg %p1446_p3  ;;  %p1331_p12 = scmp.lt.s32.totalorder %s1322_s25, %s1322_s25 }
   0xa   : > { %p1161_p6 = pnand %p1450_p4, %p1160_p5  ;;  %p1332_p13 = por %p1331_p12, %p1330_p11 }
   0xc   : > { %p1324_p8 = pneg %p1161_p6 }
   0xe   : > { %p1325_p9 = pnand %p1324_p8, %p1323_p7 }
  0x10   : > { %p1326_p10 = pneg %p1325_p9 }
  0x12   : > { %p1333_p0 = pnand %p1332_p13, %p1326_p10 }
  0x14   : > { %1336 = shalt.err (!%p1333_p0)
}
  0x15   : > { %s1365_s26 = smov [#allocation3]   ;;  %225 = sbr.rel (%p1446_p3) target bundleno = 475 (0x1db), region = 36 }
  0x16   : > { %1163 = dma.vmem_to_smem (!%p1161_p6), %s182_s24, 16, %s1365_s26, [#allocation4]  }
  0x1a   : > { %1350 = dma.done.wait (%p1450_p4), [#allocation4], 16  }
  0x1b   : > { %1352 = vsyncadd (%p1450_p4), [#allocation4], 4294967280 }
  0x1c   : > { %231 = sfence }
  0x1d   : > { %p266_p1 = scmp.lt.s32.totalorder %s1355_s15, 1  ;;  %v1366_v0 = vmov 2   ;;  %v1367_v1 = vmov 0   ;;  %v1368_v3 = vmov 3   ;;  %v1369_v4 = vmov 1   ;;  %v841_v32 = vld [vmem:[%s1712_s3 + $0x78] sm:$0xff] }
  0x1e   : > { %1227 = vset.pattern.permute.xlu1 %v1366_v0  ;;  %1225 = vset.pattern.permute.xlu0 %v1367_v1  ;;  %v1370_v5 = vmov 4   ;;  %v1371_v6 = vmov 5   ;;  %v1372_v7 = vmov 6   ;;  %v1373_v8 = vmov 8   ;;  %v840_v33 = vld [vmem:[%s1712_s3 + $0x70] sm:$0xff]  ;;  %v839_v35 = vld [vmem:[%s1712_s3 + $0x68] sm:$0xff] }
  0x1f   : > { %s1721_s15 = smov (!%p266_p1, %s1355_s15), 1  ;;  %v1374_v9 = vmov 7   ;;  %v1375_v10 = vmov 11   ;;  %v1376_v11 = vmov 9   ;;  %v1377_v12 = vmov 14   ;;  %v838_v36 = vld [vmem:[%s1712_s3 + $0x60] sm:$0xff] }
  0x20   : > { %s1037_s27 = sshll.u32 %s1721_s15, 3  ;;  %v1378_v13 = vmov 10   ;;  %v1379_v14 = vmov 17   ;;  %v1380_v15 = vmov 12   ;;  %v1381_v16 = vmov 20   ;;  %v837_v37 = vld [vmem:[%s1712_s3 + $0x58] sm:$0xff] }
  0x21   : > { %s272_s30 = scalar_lea.vmem %s1710_s1, %s1037_s27  ;;  %v1382_v17 = vmov 13   ;;  %v1383_v18 = vmov 23   ;;  %v1384_v19 = vmov 15   ;;  %v1385_v20 = vmov 26   ;;  %v836_v38 = vld [vmem:[%s1712_s3 + $0x50] sm:$0xff]  ;;  %v835_v40 = vld [vmem:[%s1712_s3 + $0x48] sm:$0xff]  ;;  %s1564_s22 = scalar_lea.vmem %s1713_s4, %s1037_s27 }
  0x22   : > { %v1477_v2 = vld [vmem:[%s272_s30] sm:$0xff]  ;;  %v1386_v21 = vmov 16   ;;  %v1387_v22 = vmov 29   ;;  %v1388_v23 = vmov 18   ;;  %v1389_v24 = vmov 31   ;;  %v833_v42 = vld [vmem:[%s1712_s3 + $0x38] sm:$0xff] }
  0x23   : > { %340 = vperm.xlu1 %1227, %v1477_v2   ;;  %309 = vperm.xlu0 %1225, %v1477_v2   ;;  %v1390_v25 = vmov 19   ;;  %v1391_v26 = vmov 21   ;;  %v1392_v27 = vmov 22   ;;  %v1393_v28 = vmov 24   ;;  %v834_v41 = vld [vmem:[%s1712_s3 + $0x40] sm:$0xff]  ;;  %v832_v43 = vld [vmem:[%s1712_s3 + $0x30] sm:$0xff] }
  0x24   : > { %v1394_v29 = vmov 25   ;;  %v1395_v30 = vmov 27   ;;  %v1396_v31 = vmov 0.0   ;;  %v1397_v34 = vmov 28   ;;  %v831_v44 = vld [vmem:[%s1712_s3 + $0x28] sm:$0xff]  ;;  %v830_v45 = vld [vmem:[%s1712_s3 + $0x20] sm:$0xff] }
  0x25   : > { %1121 = vmatprep.subr.mxu0 %v1396_v31  ;;  %v1398_v39 = vmov 30   ;;  %vm1399_vm0 = vmmov 0   ;;  %v829_v46 = vld [vmem:[%s1712_s3 + $0x18] sm:$0xff]  ;;  %v828_v47 = vld [vmem:[%s1712_s3 + $0x10] sm:$0xff]  ;;  %v827_v48 = vld [vmem:[%s1712_s3 + $0x8] sm:$0xff]  ;;  %vm298_vm1 = vcmask 7168  }
  0x26   : > { %1122 = vmatpush3.msra.mxu0 %v841_v32  ;;  %1153 = vmatprep.mubr.msk.f32.mxu0 %vm1399_vm0, %v1396_v31  ;;  %v826_v49 = vld [vmem:[%s1712_s3] sm:$0xff]  ;;  %299 = vst.msk [vmem:[%s1564_s22] sm:$0xff] %vm298_vm1, %v1396_v31  ;;  %s318_s8 = sld [smem:[#allocation3]] }
  0x27   : > { %1228 = vset.pattern.permute.xlu1 %v1368_v3  ;;  %1226 = vset.pattern.permute.xlu0 %v1369_v4  ;;  %v1039_v50 = vld [vmem:[%s1711_s2] ss:$0 sm:$0xff]  ;;  %v1042_v53 = vld [vmem:[%s1711_s2 + $0x2] ss:$0 sm:$0xff]  ;;  %v1040_v55 = vld [vmem:[%s1711_s2 + $0x1] ss:$0 sm:$0xff] }
  0x28   : > { %356 = vperm.xlu1 %1228, %v1477_v2   ;;  %324 = vperm.xlu0 %1226, %v1477_v2   ;;  %v1044_v57 = vld [vmem:[%s1711_s2 + $0x3] ss:$0 sm:$0xff]  ;;  %v1046_v62 = vld [vmem:[%s1711_s2 + $0x4] ss:$0 sm:$0xff]  ;;  %v1048_v63 = vld [vmem:[%s1711_s2 + $0x5] ss:$0 sm:$0xff] }
  0x29   : > { %1123 = vmatprep.subr.mxu0 %v1396_v31  ;;  %s1041_s9 = sld [smem:[#allocation3 + $0x1]]  ;;  %v1050_v4 = vld [vmem:[%s1711_s2 + $0x6] ss:$0 sm:$0xff] }
  0x2a   : > { %1124 = vmatpush3.msra.mxu0 %v840_v33  ;;  %s1043_s12 = sld [smem:[#allocation3 + $0x2]] }
  0x2b   : > { %1125 = vmatprep.subr.mxu0 %v1396_v31  ;;  %s1589_s13 = sld [smem:[#allocation3 + $0x3]] }
  0x2c   : > { %1229 = vset.pattern.permute.xlu1 %v1370_v5  ;;  %1230 = vset.pattern.permute.xlu0 %v1371_v6  ;;  %v1054_v6 = vld [vmem:[%s1711_s2 + $0x8] ss:$0 sm:$0xff]  ;;  %s1594_s20 = sld [smem:[#allocation3 + $0x4]] }
  0x2d   : > { %372 = vperm.xlu1 %1229, %v1477_v2   ;;  %388 = vperm.xlu0 %1230, %v1477_v2   ;;  %s1596_s21 = sld [smem:[#allocation3 + $0x5]] }
  0x2e   : > { %1126 = vmatpush3.msra.mxu0 %v839_v35  ;;  %s1601_s25 = sld [smem:[#allocation3 + $0x6]] }
  0x2f   : > { %1127 = vmatprep.subr.mxu0 %v1396_v31  ;;  %s1612_s29 = sld [smem:[#allocation3 + $0x7]] }
  0x30   : > { %1128 = vmatpush3.msra.mxu0 %v838_v36  ;;  %s1614_s30 = sld [smem:[#allocation3 + $0x8]] }
  0x31   : > { %1231 = vset.pattern.permute.xlu1 %v1372_v7  ;;  %1233 = vset.pattern.permute.xlu0 %v1373_v8  ;;  %s1057_s7 = sld [smem:[#allocation3 + $0x9]] }
  0x32   : > { %404 = vperm.xlu1 %1231, %v1477_v2   ;;  %436 = vperm.xlu0 %1233, %v1477_v2   ;;  %s1065_s26 = sld [smem:[#allocation3 + $0xd]] }
  0x33   : > { %1129 = vmatprep.subr.mxu0 %v1396_v31  ;;  %s1640_s15 = sld [smem:[#allocation3 + $0xe]] }
  0x34   : > { %1130 = vmatpush3.msra.mxu0 %v837_v37  ;;  %v1058_v37 = vld [vmem:[%s1711_s2 + $0xa] ss:$0 sm:$0xff]  ;;  %s1664_s23 = sld [smem:[#allocation3 + $0x14]] }
  0x35   : > { %1131 = vmatprep.subr.mxu0 %v1396_v31  ;;  %s1676_s5 = sld [smem:[#allocation3 + $0x17]] }
  0x36   : > { %1232 = vset.pattern.permute.xlu1 %v1374_v9  ;;  %1236 = vset.pattern.permute.xlu0 %v1375_v10  ;;  %v319_v10 = vstv %s318_s8  ;;  %s1071_s8 = sld [smem:[#allocation3 + $0x10]] }
  0x37   : > { %420 = vperm.xlu1 %1232, %v1477_v2   ;;  %484 = vperm.xlu0 %1236, %v1477_v2   ;;  %s1091_s14 = sld [smem:[#allocation3 + $0x1a]] }
  0x38   : > { %1132 = vmatpush3.msra.mxu0 %v836_v38  ;;  %s1097_s28 = sld [smem:[#allocation3 + $0x1d]] }
  0x39   : > { %1133 = vmatprep.subr.mxu0 %v1396_v31  ;;  %s1099_s27 = sld [smem:[#allocation3 + $0x1e]] }
  0x3a   : > { %1134 = vmatpush3.msra.mxu0 %v835_v40 }
  0x3b   : > { %1234 = vset.pattern.permute.xlu1 %v1376_v11  ;;  %1239 = vset.pattern.permute.xlu0 %v1377_v12  ;;  %v1052_v11 = vld [vmem:[%s1711_s2 + $0x7] ss:$0 sm:$0xff] }
  0x3c   : > { %452 = vperm.xlu1 %1234, %v1477_v2   ;;  %532 = vperm.xlu0 %1239, %v1477_v2  }
  0x3d   : > { %1135 = vmatprep.subr.mxu0 %v1396_v31 }
  0x3e   : > { %1136 = vmatpush3.msra.mxu0 %v834_v41  ;;  %v415_v41 = vstv %s1601_s25  ;;  %s1095_s25 = sld [smem:[#allocation3 + $0x1c]] }
  0x3f   : > { %1137 = vmatprep.subr.mxu0 %v1396_v31 }
  0x40   : > { %1235 = vset.pattern.permute.xlu1 %v1378_v13  ;;  %1242 = vset.pattern.permute.xlu0 %v1379_v14  ;;  %v335_v13 = vstv %s1041_s9  ;;  %s1652_s9 = sld [smem:[#allocation3 + $0x11]] }
  0x41   : > { %468 = vperm.xlu1 %1235, %v1477_v2   ;;  %580 = vperm.xlu0 %1242, %v1477_v2  }
  0x42   : > { %1138 = vmatpush3.msra.mxu0 %v833_v42 }
  0x43   : > { %1139 = vmatprep.subr.mxu0 %v1396_v31 }
  0x44   : > { %1140 = vmatpush3.msra.mxu0 %v832_v43 }
  0x45   : > { %1237 = vset.pattern.permute.xlu1 %v1380_v15  ;;  %1245 = vset.pattern.permute.xlu0 %v1381_v16 }
  0x46   : > { %500 = vperm.xlu1 %1237, %v1477_v2   ;;  %628 = vperm.xlu0 %1245, %v1477_v2  }
  0x47   : > { %1141 = vmatprep.subr.mxu0 %v1396_v31 }
  0x48   : > { %1142 = vmatpush3.msra.mxu0 %v831_v44 }
  0x49   : > { %1143 = vmatprep.subr.mxu0 %v1396_v31 }
  0x4a   : > { %1238 = vset.pattern.permute.xlu1 %v1382_v17  ;;  %1248 = vset.pattern.permute.xlu0 %v1383_v18 }
  0x4b   : > { %516 = vperm.xlu1 %1238, %v1477_v2   ;;  %676 = vperm.xlu0 %1248, %v1477_v2  }
  0x4c   : > { %1144 = vmatpush3.msra.mxu0 %v830_v45 }
  0x4d   : > { %1145 = vmatprep.subr.mxu0 %v1396_v31 }
  0x4e   : > { %1146 = vmatpush3.msra.mxu0 %v829_v46 }
  0x4f   : > { %1240 = vset.pattern.permute.xlu1 %v1384_v19  ;;  %1251 = vset.pattern.permute.xlu0 %v1385_v20  ;;  %v351_v19 = vstv %s1043_s12  ;;  %s1059_s12 = sld [smem:[#allocation3 + $0xa]] }
  0x50   : > { %548 = vperm.xlu1 %1240, %v1477_v2   ;;  %724 = vperm.xlu0 %1251, %v1477_v2  }
  0x51   : > { %1147 = vmatprep.subr.mxu0 %v1396_v31 }
  0x52   : > { %1148 = vmatpush3.msra.mxu0 %v828_v47 }
  0x53   : > { %1149 = vmatprep.subr.mxu0 %v1396_v31 }
  0x54   : > { %1241 = vset.pattern.permute.xlu1 %v1386_v21  ;;  %1254 = vset.pattern.permute.xlu0 %v1387_v22  ;;  %v1056_v21 = vld [vmem:[%s1711_s2 + $0x9] ss:$0 sm:$0xff] }
  0x55   : > { %564 = vperm.xlu1 %1241, %v1477_v2   ;;  %772 = vperm.xlu0 %1254, %v1477_v2  }
  0x56   : > { %1150 = vmatpush3.msra.mxu0 %v827_v48  ;;  %v1062_v48 = vld [vmem:[%s1711_s2 + $0xc] ss:$0 sm:$0xff] }
  0x57   : > { %1151 = vmatprep.subr.mxu0 %v1396_v31  ;;  %v399_v31 = vstv %s1596_s21  ;;  %s1077_s21 = sld [smem:[#allocation3 + $0x13]] }
  0x58   : > { %1152 = vmatpush3.msra.mxu0 %v826_v49  ;;  %v431_v49 = vstv %s1612_s29  ;;  %s1069_s29 = sld [smem:[#allocation3 + $0xf]] }
  0x59   : > { %1243 = vset.pattern.permute.xlu1 %v1388_v23  ;;  %1257 = vset.pattern.permute.xlu0 %v1389_v24  ;;  %v367_v23 = vstv %s1589_s13  ;;  %s1628_s13 = sld [smem:[#allocation3 + $0xb]] }
  0x5a   : > { %596 = vperm.xlu1 %1243, %v1477_v2  }
  0x5e   : > { %1244 = vset.pattern.permute.xlu1 %v1390_v25 }
  0x5f   : > { %612 = vperm.xlu1 %1244, %v1477_v2  }
  0x63   : > { %1246 = vset.pattern.permute.xlu1 %v1391_v26 }
  0x64   : > { %644 = vperm.xlu1 %1246, %v1477_v2  }
  0x68   : > { %1247 = vset.pattern.permute.xlu1 %v1392_v27 }
  0x69   : > { %660 = vperm.xlu1 %1247, %v1477_v2  }
  0x6d   : > { %1249 = vset.pattern.permute.xlu1 %v1393_v28  ;;  %v1060_v28 = vld [vmem:[%s1711_s2 + $0xb] ss:$0 sm:$0xff] }
  0x6e   : > { %692 = vperm.xlu1 %1249, %v1477_v2  }
  0x72   : > { %1250 = vset.pattern.permute.xlu1 %v1394_v29 }
  0x73   : > { %708 = vperm.xlu1 %1250, %v1477_v2  }
  0x77   : > { %1252 = vset.pattern.permute.xlu1 %v1395_v30 }
  0x78   : > { %740 = vperm.xlu1 %1252, %v1477_v2  }
  0x7c   : > { %1253 = vset.pattern.permute.xlu1 %v1397_v34 }
  0x7d   : > { %756 = vperm.xlu1 %1253, %v1477_v2  }
  0x81   : > { %1255 = vset.pattern.permute.xlu1 %v1398_v39 }
  0x82   : > { %788 = vperm.xlu1 %1255, %v1477_v2  }
  0x86   : > { %1256 = vset.pattern.permute.xlu1 %v1389_v24  ;;  %v383_v24 = vstv %s1594_s20  ;;  %s1063_s20 = sld [smem:[#allocation3 + $0xc]] }
  0x87   : > { %804 = vperm.xlu1 %1256, %v1477_v2  }
  0x9e   : > { %v341_v51 = vpop.permute.xlu1 %340  ;;  %v310_v52 = vpop.permute.xlu0 %309 }
  0x9f   : > { %v316_v54 = vadd.f32 %v1039_v50, %v310_v52  ;;  %v347_v56 = vadd.f32 %v1042_v53, %v341_v51  ;;  %v1066_v52 = vld [vmem:[%s1711_s2 + $0xe] ss:$0 sm:$0xff] }
  0xa1   : > { %1258 = vtanh.f32 %v316_v54 }
  0xa2   : > { %1260 = vtanh.f32 %v347_v56 }
  0xa3   : > { %v357_v58 = vpop.permute.xlu1 %356  ;;  %v325_v59 = vpop.permute.xlu0 %324 }
  0xa4   : > { %v331_v60 = vadd.f32 %v1040_v55, %v325_v59  ;;  %v363_v61 = vadd.f32 %v1044_v57, %v357_v58  ;;  %v447_v55 = vstv %s1614_s30  ;;  %v1064_v59 = vld [vmem:[%s1711_s2 + $0xd] ss:$0 sm:$0xff]  ;;  %s1083_s30 = sld [smem:[#allocation3 + $0x16]] }
  0xa6   : > { %1262 = vtanh.f32 %v331_v60 }
  0xa7   : > { %1264 = vtanh.f32 %v363_v61 }
  0xa8   : > { %v373_v0 = vpop.permute.xlu1 %372  ;;  %v389_v1 = vpop.permute.xlu0 %388 }
  0xa9   : > { %v379_v2 = vadd.f32 %v1046_v62, %v373_v0  ;;  %v395_v3 = vadd.f32 %v1048_v63, %v389_v1  ;;  %v463_v63 = vstv %s1057_s7 }
  0xab   : > { %1266 = vtanh.f32 %v379_v2 }
  0xac   : > { %1268 = vtanh.f32 %v395_v3 }
  0xad   : > { %v405_v5 = vpop.permute.xlu1 %404  ;;  %v437_v7 = vpop.permute.xlu0 %436 }
  0xae   : > { %v411_v8 = vadd.f32 %v1050_v4, %v405_v5  ;;  %v1259_v9 = vpop.eup %1258  ;;  %v443_v12 = vadd.f32 %v1054_v6, %v437_v7  ;;  %v1068_v5 = vld [vmem:[%s1711_s2 + $0xf] ss:$0 sm:$0xff]  ;;  %v479_v6 = vstv %s1059_s12  ;;  %s1075_s12 = sld [smem:[#allocation3 + $0x12]] }
  0xaf   : > { %v1261_v15 = vpop.eup %1260  ;;  %v320_v16 = vmul.f32 %v1259_v9, %v319_v10  ;;  %v1072_v9 = vld [vmem:[%s1711_s2 + $0x11] ss:$0 sm:$0xff] }
  0xb0   : > { %1270 = vtanh.f32 %v411_v8  ;;  %v352_v25 = vmul.f32 %v1261_v15, %v351_v19 }
  0xb1   : > { %1272 = vtanh.f32 %v443_v12  ;;  %v495_v12 = vstv %s1628_s13  ;;  %s1089_s13 = sld [smem:[#allocation3 + $0x19]] }
  0xb2   : > { %v421_v14 = vpop.permute.xlu1 %420  ;;  %v485_v29 = vpop.permute.xlu0 %484 }
  0xb3   : > { %v427_v17 = vadd.f32 %v1052_v11, %v421_v14  ;;  %v1263_v18 = vpop.eup %1262  ;;  %v491_v38 = vadd.f32 %v1060_v28, %v485_v29 }
  0xb4   : > { %v336_v20 = vmul.f32 %v1263_v18, %v335_v13  ;;  %v1265_v22 = vpop.eup %1264 }
  0xb5   : > { %1274 = vtanh.f32 %v427_v17  ;;  %v368_v34 = vmul.f32 %v1265_v22, %v367_v23 }
  0xb6   : > { %v337_v26 = vadd.f32 %v336_v20, %v320_v16  ;;  %v1070_v16 = vld [vmem:[%s1711_s2 + $0x10] ss:$0 sm:$0xff]  ;;  %v511_v20 = vstv %s1063_s20 }
  0xb7   : > { %v453_v27 = vpop.permute.xlu1 %452  ;;  %v533_v53 = vpop.permute.xlu0 %532 }
  0xb8   : > { %v1267_v30 = vpop.eup %1266  ;;  %v459_v32 = vadd.f32 %v1056_v21, %v453_v27  ;;  %v353_v35 = vadd.f32 %v352_v25, %v337_v26  ;;  %v539_v60 = vadd.f32 %v1066_v52, %v533_v53  ;;  %v1074_v26 = vld [vmem:[%s1711_s2 + $0x12] ss:$0 sm:$0xff]  ;;  %v527_v27 = vstv %s1065_s26  ;;  %s1081_s26 = sld [smem:[#allocation3 + $0x15]] }
  0xb9   : > { %v1269_v33 = vpop.eup %1268  ;;  %v384_v36 = vmul.f32 %v1267_v30, %v383_v24  ;;  %v1078_v30 = vld [vmem:[%s1711_s2 + $0x14] ss:$0 sm:$0xff] }
  0xba   : > { %1276 = vtanh.f32 %v459_v32  ;;  %v369_v39 = vadd.f32 %v368_v34, %v353_v35  ;;  %v400_v40 = vmul.f32 %v1269_v33, %v399_v31  ;;  %v543_v33 = vstv %s1640_s15 }
  0xbb   : > { %1278 = vtanh.f32 %v491_v38 }
  0xbc   : > { %v469_v42 = vpop.permute.xlu1 %468  ;;  %v385_v44 = vadd.f32 %v384_v36, %v369_v39  ;;  %v581_v10 = vpop.permute.xlu0 %580 }
  0xbd   : > { %v1271_v43 = vpop.eup %1270  ;;  %v475_v45 = vadd.f32 %v1058_v37, %v469_v42  ;;  %v587_v17 = vadd.f32 %v1072_v9, %v581_v10  ;;  %v1076_v37 = vld [vmem:[%s1711_s2 + $0x13] ss:$0 sm:$0xff] }
  0xbe   : > { %v401_v46 = vadd.f32 %v400_v40, %v385_v44  ;;  %v416_v47 = vmul.f32 %v1271_v43, %v415_v41  ;;  %v1273_v50 = vpop.eup %1272  ;;  %v559_v41 = vstv %s1069_s29  ;;  %s1101_s29 = sld [smem:[#allocation3 + $0x1f]] }
  0xbf   : > { %1280 = vtanh.f32 %v475_v45  ;;  %v448_v62 = vmul.f32 %v1273_v50, %v447_v55 }
  0xc0   : > { %v417_v57 = vadd.f32 %v416_v47, %v401_v46  ;;  %v1080_v47 = vld [vmem:[%s1711_s2 + $0x15] ss:$0 sm:$0xff] }
  0xc1   : > { %v501_v51 = vpop.permute.xlu1 %500  ;;  %v629_v31 = vpop.permute.xlu0 %628 }
  0xc2   : > { %v1275_v54 = vpop.eup %1274  ;;  %v507_v56 = vadd.f32 %v1062_v48, %v501_v51  ;;  %v635_v38 = vadd.f32 %v1078_v30, %v629_v31  ;;  %v575_v48 = vstv %s1071_s8  ;;  %v1084_v51 = vld [vmem:[%s1711_s2 + $0x17] ss:$0 sm:$0xff]  ;;  %s1087_s8 = sld [smem:[#allocation3 + $0x18]] }
  0xc3   : > { %v432_v58 = vmul.f32 %v1275_v54, %v431_v49  ;;  %v591_v54 = vstv %s1652_s9 }
  0xc4   : > { %1282 = vtanh.f32 %v507_v56 }
  0xc5   : > { %v433_v61 = vadd.f32 %v432_v58, %v417_v57  ;;  %1284 = vtanh.f32 %v539_v60  ;;  %v1082_v58 = vld [vmem:[%s1711_s2 + $0x16] ss:$0 sm:$0xff] }
  0xc6   : > { %v517_v0 = vpop.permute.xlu1 %516  ;;  %v677_v52 = vpop.permute.xlu0 %676 }
  0xc7   : > { %v1277_v1 = vpop.eup %1276  ;;  %v523_v2 = vadd.f32 %v1064_v59, %v517_v0  ;;  %v449_v3 = vadd.f32 %v448_v62, %v433_v61  ;;  %v683_v59 = vadd.f32 %v1084_v51, %v677_v52  ;;  %v607_v62 = vstv %s1075_s12 }
  0xc8   : > { %v464_v4 = vmul.f32 %v1277_v1, %v463_v63  ;;  %v1279_v7 = vpop.eup %1278  ;;  %v735_v51 = vstv %s1091_s14 }
  0xc9   : > { %1286 = vtanh.f32 %v523_v2  ;;  %v496_v19 = vmul.f32 %v1279_v7, %v495_v12 }
  0xca   : > { %v465_v14 = vadd.f32 %v464_v4, %v449_v3  ;;  %v1086_v4 = vld [vmem:[%s1711_s2 + $0x18] ss:$0 sm:$0xff] }
  0xcb   : > { %v549_v8 = vpop.permute.xlu1 %548  ;;  %v725_v9 = vpop.permute.xlu0 %724 }
  0xcc   : > { %v1281_v11 = vpop.eup %1280  ;;  %v555_v13 = vadd.f32 %v1068_v5, %v549_v8  ;;  %v623_v5 = vstv %s1077_s21  ;;  %v1090_v8 = vld [vmem:[%s1711_s2 + $0x1a] ss:$0 sm:$0xff]  ;;  %s1093_s21 = sld [smem:[#allocation3 + $0x1b]] }
  0xcd   : > { %v480_v15 = vmul.f32 %v1281_v11, %v479_v6  ;;  %v639_v11 = vstv %s1664_s23 }
  0xce   : > { %1288 = vtanh.f32 %v555_v13 }
  0xcf   : > { %v481_v18 = vadd.f32 %v480_v15, %v465_v14  ;;  %1290 = vtanh.f32 %v587_v17  ;;  %v1088_v15 = vld [vmem:[%s1711_s2 + $0x19] ss:$0 sm:$0xff] }
  0xd0   : > { %v565_v21 = vpop.permute.xlu1 %564  ;;  %v773_v30 = vpop.permute.xlu0 %772 }
  0xd1   : > { %v1283_v22 = vpop.eup %1282  ;;  %v571_v23 = vadd.f32 %v1070_v16, %v565_v21  ;;  %v497_v24 = vadd.f32 %v496_v19, %v481_v18  ;;  %v731_v16 = vadd.f32 %v1090_v8, %v725_v9  ;;  %v655_v19 = vstv %s1081_s26 }
  0xd2   : > { %v512_v25 = vmul.f32 %v1283_v22, %v511_v20  ;;  %v1285_v28 = vpop.eup %1284  ;;  %v799_v8 = vstv %s1099_s27 }
  0xd3   : > { %1292 = vtanh.f32 %v571_v23  ;;  %v544_v40 = vmul.f32 %v1285_v28, %v543_v33 }
  0xd4   : > { %v513_v35 = vadd.f32 %v512_v25, %v497_v24  ;;  %v1092_v25 = vld [vmem:[%s1711_s2 + $0x1b] ss:$0 sm:$0xff] }
  0xd5   : > { %v597_v29 = vpop.permute.xlu1 %596 }
  0xd6   : > { %v1287_v32 = vpop.eup %1286  ;;  %v603_v34 = vadd.f32 %v1074_v26, %v597_v29  ;;  %v671_v26 = vstv %s1083_s30  ;;  %v1096_v29 = vld [vmem:[%s1711_s2 + $0x1d] ss:$0 sm:$0xff] }
  0xd7   : > { %v528_v36 = vmul.f32 %v1287_v32, %v527_v27  ;;  %v687_v32 = vstv %s1676_s5 }
  0xd8   : > { %1294 = vtanh.f32 %v603_v34 }
  0xd9   : > { %v529_v39 = vadd.f32 %v528_v36, %v513_v35  ;;  %1296 = vtanh.f32 %v635_v38  ;;  %v1094_v36 = vld [vmem:[%s1711_s2 + $0x1c] ss:$0 sm:$0xff] }
  0xda   : > { %v613_v42 = vpop.permute.xlu1 %612 }
  0xdb   : > { %v1289_v43 = vpop.eup %1288  ;;  %v619_v44 = vadd.f32 %v1076_v37, %v613_v42  ;;  %v545_v45 = vadd.f32 %v544_v40, %v529_v39  ;;  %v779_v37 = vadd.f32 %v1096_v29, %v773_v30  ;;  %v703_v40 = vstv %s1087_s8 }
  0xdc   : > { %v560_v46 = vmul.f32 %v1289_v43, %v559_v41  ;;  %v1291_v49 = vpop.eup %1290 }
  0xdd   : > { %1298 = vtanh.f32 %v619_v44  ;;  %v592_v61 = vmul.f32 %v1291_v49, %v591_v54 }
  0xde   : > { %v561_v56 = vadd.f32 %v560_v46, %v545_v45  ;;  %v1098_v46 = vld [vmem:[%s1711_s2 + $0x1e] ss:$0 sm:$0xff] }
  0xdf   : > { %v645_v50 = vpop.permute.xlu1 %644 }
  0xe0   : > { %v1293_v53 = vpop.eup %1292  ;;  %v651_v55 = vadd.f32 %v1080_v47, %v645_v50  ;;  %v719_v47 = vstv %s1089_s13 }
  0xe1   : > { %v576_v57 = vmul.f32 %v1293_v53, %v575_v48 }
  0xe2   : > { %1300 = vtanh.f32 %v651_v55  ;;  %v1100_v55 = vld [vmem:[%s1711_s2 + $0x1f] ss:$0 sm:$0xff] }
  0xe3   : > { %v577_v60 = vadd.f32 %v576_v57, %v561_v56  ;;  %1302 = vtanh.f32 %v683_v59  ;;  %v751_v59 = vstv %s1093_s21 }
  0xe4   : > { %v661_v63 = vpop.permute.xlu1 %660 }
  0xe5   : > { %v1295_v0 = vpop.eup %1294  ;;  %v667_v1 = vadd.f32 %v1082_v58, %v661_v63  ;;  %v593_v2 = vadd.f32 %v592_v61, %v577_v60 }
  0xe6   : > { %v608_v3 = vmul.f32 %v1295_v0, %v607_v62  ;;  %v1297_v6 = vpop.eup %1296  ;;  %v767_v0 = vstv %s1095_s25 }
  0xe7   : > { %1304 = vtanh.f32 %v667_v1  ;;  %v640_v18 = vmul.f32 %v1297_v6, %v639_v11 }
  0xe8   : > { %v609_v13 = vadd.f32 %v608_v3, %v593_v2  ;;  %v783_v3 = vstv %s1097_s28 }
  0xe9   : > { %v693_v7 = vpop.permute.xlu1 %692 }
  0xea   : > { %v1299_v10 = vpop.eup %1298  ;;  %v699_v12 = vadd.f32 %v1086_v4, %v693_v7 }
  0xeb   : > { %v624_v14 = vmul.f32 %v1299_v10, %v623_v5 }
  0xec   : > { %1306 = vtanh.f32 %v699_v12  ;;  %v815_v12 = vstv %s1101_s29 }
  0xed   : > { %v625_v17 = vadd.f32 %v624_v14, %v609_v13  ;;  %1308 = vtanh.f32 %v731_v16 }
  0xee   : > { %v709_v20 = vpop.permute.xlu1 %708 }
  0xef   : > { %v1301_v21 = vpop.eup %1300  ;;  %v715_v22 = vadd.f32 %v1088_v15, %v709_v20  ;;  %v641_v23 = vadd.f32 %v640_v18, %v625_v17  ;;  %v824_v17 = vld [vmem:[%s1564_s22] sm:$0xff] }
  0xf0   : > { %v656_v24 = vmul.f32 %v1301_v21, %v655_v19  ;;  %v1303_v27 = vpop.eup %1302 }
  0xf1   : > { %1310 = vtanh.f32 %v715_v22  ;;  %v688_v39 = vmul.f32 %v1303_v27, %v687_v32 }
  0xf2   : > { %v657_v34 = vadd.f32 %v656_v24, %v641_v23 }
  0xf3   : > { %v741_v28 = vpop.permute.xlu1 %740 }
  0xf4   : > { %v1305_v31 = vpop.eup %1304  ;;  %v747_v33 = vadd.f32 %v1092_v25, %v741_v28 }
  0xf5   : > { %v672_v35 = vmul.f32 %v1305_v31, %v671_v26 }
  0xf6   : > { %1312 = vtanh.f32 %v747_v33 }
  0xf7   : > { %v673_v38 = vadd.f32 %v672_v35, %v657_v34  ;;  %1314 = vtanh.f32 %v779_v37 }
  0xf8   : > { %v757_v41 = vpop.permute.xlu1 %756 }
  0xf9   : > { %v1307_v42 = vpop.eup %1306  ;;  %v763_v43 = vadd.f32 %v1094_v36, %v757_v41  ;;  %v689_v44 = vadd.f32 %v688_v39, %v673_v38 }
  0xfa   : > { %v704_v45 = vmul.f32 %v1307_v42, %v703_v40  ;;  %v1309_v48 = vpop.eup %1308 }
  0xfb   : > { %1316 = vtanh.f32 %v763_v43  ;;  %v736_v56 = vmul.f32 %v1309_v48, %v735_v51 }
  0xfc   : > { %v705_v53 = vadd.f32 %v704_v45, %v689_v44 }
  0xfd   : > { %v789_v49 = vpop.permute.xlu1 %788 }
  0xfe   : > { %v1311_v50 = vpop.eup %1310  ;;  %v795_v52 = vadd.f32 %v1098_v46, %v789_v49 }
  0xff   : > { %v720_v54 = vmul.f32 %v1311_v50, %v719_v47 }
 0x100   : > { %1318 = vtanh.f32 %v795_v52 }
 0x101   : > { %v721_v57 = vadd.f32 %v720_v54, %v705_v53 }
 0x102   : > { %v805_v58 = vpop.permute.xlu1 %804 }
 0x103   : > { %v1313_v60 = vpop.eup %1312  ;;  %v811_v61 = vadd.f32 %v1100_v55, %v805_v58  ;;  %v737_v62 = vadd.f32 %v736_v56, %v721_v57 }
 0x104   : > { %v752_v63 = vmul.f32 %v1313_v60, %v751_v59  ;;  %v1315_v1 = vpop.eup %1314 }
 0x105   : > { %1320 = vtanh.f32 %v811_v61  ;;  %v784_v7 = vmul.f32 %v1315_v1, %v783_v3 }
 0x106   : > { %v753_v4 = vadd.f32 %v752_v63, %v737_v62 }
 0x108   : > { %v1317_v2 = vpop.eup %1316 }
 0x109   : > { %v768_v5 = vmul.f32 %v1317_v2, %v767_v0 }
 0x10b   : > { %v769_v6 = vadd.f32 %v768_v5, %v753_v4 }
 0x10d   : > { %v1319_v9 = vpop.eup %1318  ;;  %v785_v10 = vadd.f32 %v784_v7, %v769_v6 }
 0x10e   : > { %v800_v11 = vmul.f32 %v1319_v9, %v799_v8 }
 0x110   : > { %v801_v14 = vadd.f32 %v800_v11, %v785_v10 }
 0x112   : > { %v1321_v13 = vpop.eup %1320 }
 0x113   : > { %v816_v15 = vmul.f32 %v1321_v13, %v815_v12 }
 0x115   : > { %v817_v16 = vadd.f32 %v816_v15, %v801_v14 }
 0x117   : > { %1154 = vmatmul.mubr.f32.vlgmr.msra.gmra.mxu0 %v817_v16 }
 0x1d7   : > { %v908_v18 = vpop.f32.mrf.mxu0 }
 0x1d8   : > { %v912_v19 = vadd.f32 %v908_v18, %v824_v17 }
 0x1d9   : > { %v1155_v20 = vpop.f32.mrf.mxu0 }
 0x1da   : > { %914 = vst.msk [vmem:[%s1564_s22] sm:$0xff] %vm298_vm1, %v912_v19 }
 0x1db PF: > { %s15_s17 = sadd.s32 1, %s1363_s17   ;;  %s1716_s15 = smov %s1359_s16 }
 0x1dc   : > { %p12_p2 = scmp.ge.s32.totalorder %s15_s17, 4   ;;  %s1717_s16 = smov %s1719_s19 }
 0x1de   :  { %14 = sbr.rel (!%p12_p2) target bundleno = 2 (0x2), region = 89 }
 0x1e3   :  { %934 = vsyncpa [#allocation4], 1 }
 0x1e4   :  { %936 = vsyncpa [#allocation4 + $0x1], 1 }

</bundles_post_ra>
